<compile_context>
chip_gen: v7x
topology: tpu7x:2x2x1
jax: 0.10.0
libtpu: 0.0.40
codegen_flags: <defaults>
</compile_context>

<pallas_src>
import functools

import jax
import jax.numpy as jnp
from jax import lax
from jax.experimental import pallas as pl
from jax.experimental.pallas import tpu as pltpu


def _round_up(n: int, m: int) -> int:
    return ((n + m - 1) // m) * m


# ----------------------------------------------------------------------------
# Pallas kernel: fused  conv3x3(+BN,ReLU)  ->  conv1x1(+BN)  ->  Sigmoid
# One grid step == one batch image.  In-kernel layouts:
#   xp_ref : (C, NIN)       bf16  padded image, flat (hp*Wp + wp) on the lane axis
#   w1_ref : (9, C_mid, C)  bf16  folded 3x3 weights, one (C_mid, C) slice per tap
#   b1_ref : (C_mid, 1)     f32   folded conv1+BN1 bias
#   w2_ref : (C_out, C_mid) f32   folded 1x1 weights
#   b2_ref : (C_out, 1)     f32   folded conv2+BN2 bias
#   o_ref  : (C_out, NOUT)  f32   conv outputs on the padded flat grid (lane-dense)
# ----------------------------------------------------------------------------
def _outconv_kernel(xp_ref, w1_ref, b1_ref, w2_ref, b2_ref, o_ref, *, wp):
    nout = o_ref.shape[-1]
    c_mid = w1_ref.shape[1]

    x = xp_ref[...]                                            # (C, NIN) bf16, one load

    # conv1 (3x3 / pad 1): output lane n corresponds to padded coords
    # (n // wp, n % wp); tap (ky, kx) reads the lane window starting at the
    # static flat offset ky*wp + kx.  Accumulate 9 tap matmuls in f32 on the MXU,
    # with the folded bias as the accumulator init.
    acc = jnp.broadcast_to(b1_ref[...], (c_mid, nout))         # (C_mid, NOUT) f32
    for ky in range(3):
        for kx in range(3):
            t = ky * 3 + kx
            s = ky * wp + kx
            acc = acc + jnp.dot(w1_ref[t], x[:, s:s + nout],
                                preferred_element_type=jnp.float32)
    y1 = jnp.maximum(acc, 0.0)                                 # folded BN1 + ReLU, f32

    # conv2 (1x1) + folded BN2, all in f32 (no bf16 round-trip of the intermediate).
    y2 = jnp.dot(w2_ref[...], y1, preferred_element_type=jnp.float32) + b2_ref[...]

    # Sigmoid as a single EUP op; lane-dense (C_out, NOUT) store.
    o_ref[...] = 0.5 * jnp.tanh(0.5 * y2) + 0.5


# ----------------------------------------------------------------------------
# Wrapper: single fused pad+cast, one pallas_call over batches, NCHW un-pad
# ----------------------------------------------------------------------------
def outconv_forward(x_nchw, params):
    """x: (B, in_ch, H, W) f32  ->  (B, out_ch, H, W) f32."""
    w1, b1, w2, b2 = params["w1"], params["b1"], params["w2"], params["b2"]
    B, C, H, W = x_nchw.shape
    n_taps, C_mid, C_w = w1.shape
    C_out = w2.shape[0]
    assert n_taps == 9 and C_w == C
    Hp, Wp = H + 2, W + 2

    # Per-batch output lane width (covers the full padded-row grid, lane-dense)
    # and input lane width (output width + max tap shift), both 128-aligned.
    NOUT = _round_up(H * Wp, 128)
    NIN = _round_up(NOUT + 2 * Wp + 2, 128)
    # TODO(synk): for large H*W the per-batch image should be row-tiled with a
    # 2-row halo instead of one whole-image block per grid step.

    # Single pad+cast pass (bf16 halves wrapper HBM traffic): zero-pad the 3x3
    # halo, flatten the padded spatial grid per batch, pad the flat tail so the
    # largest in-kernel tap window stays in bounds.
    xp = jnp.pad(x_nchw.astype(jnp.bfloat16), ((0, 0), (0, 0), (1, 1), (1, 1)))
    xp = xp.reshape(B, C, Hp * Wp)
    xp = jnp.pad(xp, ((0, 0), (0, 0), (0, NIN - Hp * Wp)))

    kernel = functools.partial(_outconv_kernel, wp=Wp)

    out = pl.pallas_call(
        kernel,
        out_shape=jax.ShapeDtypeStruct((B, C_out, NOUT), jnp.float32),
        grid_spec=pltpu.PrefetchScalarGridSpec(
            num_scalar_prefetch=0,
            grid=(B,),
            in_specs=[
                pl.BlockSpec((None, C, NIN), lambda b: (b, 0, 0)),   # padded image / batch
                pl.BlockSpec((9, C_mid, C), lambda b: (0, 0, 0)),    # W1 taps (resident)
                pl.BlockSpec((C_mid, 1), lambda b: (0, 0)),          # folded bias 1 (resident)
                pl.BlockSpec((C_out, C_mid), lambda b: (0, 0)),      # W2 (resident)
                pl.BlockSpec((C_out, 1), lambda b: (0, 0)),          # folded bias 2 (resident)
            ],
            out_specs=pl.BlockSpec((None, C_out, NOUT), lambda b: (b, 0, 0)),
        ),
        compiler_params=pltpu.CompilerParams(
            dimension_semantics=("parallel",),
            vmem_limit_bytes=32 * 1024 * 1024,
        ),
    )(xp, w1, b1, w2, b2)

    # Lane n of the padded flat output grid == padded coords (n // Wp, n % Wp);
    # valid conv outputs are rows < H, cols < W.
    out = out[:, :, : H * Wp].reshape(B, C_out, H, Wp)[:, :, :, :W]
    return out


# ----------------------------------------------------------------------------
# Parameters: PyTorch-style raw params + BN folding (inference running stats)
# ----------------------------------------------------------------------------
def init_raw_params(key, in_ch, out_ch):
    c_mid = in_ch // 2
    ks = jax.random.split(key, 12)
    n = jax.random.normal
    return dict(
        w1=0.1 * n(ks[0], (c_mid, in_ch, 3, 3), jnp.float32),
        b1=0.05 * n(ks[1], (c_mid,), jnp.float32),
        g1=1.0 + 0.1 * n(ks[2], (c_mid,), jnp.float32),
        be1=0.05 * n(ks[3], (c_mid,), jnp.float32),
        m1=0.05 * n(ks[4], (c_mid,), jnp.float32),
        v1=1.0 + 0.1 * jnp.abs(n(ks[5], (c_mid,), jnp.float32)),
        w2=0.1 * n(ks[6], (out_ch, c_mid, 1, 1), jnp.float32),
        b2=0.05 * n(ks[7], (out_ch,), jnp.float32),
        g2=1.0 + 0.1 * n(ks[8], (out_ch,), jnp.float32),
        be2=0.05 * n(ks[9], (out_ch,), jnp.float32),
        m2=0.05 * n(ks[10], (out_ch,), jnp.float32),
        v2=1.0 + 0.1 * jnp.abs(n(ks[11], (out_ch,), jnp.float32)),
    )


def fold_params(raw, eps=1e-5):
    """Fold Conv+BatchNorm into per-tap weights (bf16) and f32 biases."""
    # TODO(synk): BatchNorm folded with fixed running stats (inference mode);
    # training-mode batch statistics are not reproduced.
    s1 = raw["g1"] / jnp.sqrt(raw["v1"] + eps)
    s2 = raw["g2"] / jnp.sqrt(raw["v2"] + eps)
    c_mid, c_in = raw["w1"].shape[:2]
    c_out = raw["w2"].shape[0]
    # (C_mid, C_in, 3, 3) -> (9, C_mid, C_in), tap order t = ky*3 + kx
    w1 = (raw["w1"] * s1[:, None, None, None]).transpose(2, 3, 0, 1)
    w1 = w1.reshape(9, c_mid, c_in)
    b1 = ((raw["b1"] - raw["m1"]) * s1 + raw["be1"]).reshape(c_mid, 1)
    w2 = raw["w2"].reshape(c_out, c_mid) * s2[:, None]
    b2 = ((raw["b2"] - raw["m2"]) * s2 + raw["be2"]).reshape(c_out, 1)
    return dict(w1=w1.astype(jnp.bfloat16), b1=b1.astype(jnp.float32),
                w2=w2.astype(jnp.float32), b2=b2.astype(jnp.float32))


# ----------------------------------------------------------------------------
# Pure-JAX f32 reference (for correctness)
# ----------------------------------------------------------------------------
def outconv_ref(x, raw, eps=1e-5):
    dn = ("NCHW", "OIHW", "NCHW")

    def bn(y, g, be, m, v):
        inv = g / jnp.sqrt(v + eps)
        return (y - m[None, :, None, None]) * inv[None, :, None, None] \
            + be[None, :, None, None]

    y = lax.conv_general_dilated(x, raw["w1"], (1, 1), ((1, 1), (1, 1)),
                                 dimension_numbers=dn)
    y = y + raw["b1"][None, :, None, None]
    y = jnp.maximum(bn(y, raw["g1"], raw["be1"], raw["m1"], raw["v1"]), 0.0)
    y = lax.conv_general_dilated(y, raw["w2"], (1, 1), ((0, 0), (0, 0)),
                                 dimension_numbers=dn)
    y = y + raw["b2"][None, :, None, None]
    y = bn(y, raw["g2"], raw["be2"], raw["m2"], raw["v2"])
    return jax.nn.sigmoid(y)


if __name__ == "__main__":
    B, in_ch, out_ch, H, W = 2, 64, 4, 16, 16

    key = jax.random.PRNGKey(0)
    kx, kp = jax.random.split(key)
    x = jax.random.normal(kx, (B, in_ch, H, W), jnp.float32)   # NCHW like PyTorch

    raw = init_raw_params(kp, in_ch, out_ch)
    params = fold_params(raw)

    fwd = jax.jit(outconv_forward)
    out = jax.block_until_ready(fwd(x, params))
    assert out.shape == (B, out_ch, H, W)
    assert bool(jnp.all(jnp.isfinite(out)))

    ref = outconv_ref(x, raw)
    max_err = float(jnp.max(jnp.abs(out - ref)))
    assert max_err < 2e-2, f"max abs error vs reference: {max_err}"

    print("KERNEL_OK")
</pallas_src>

<mosaic_0001>
module attributes {stable_mosaic.version = 11 : i64} {
  func.func @_outconv_kernel(%arg0: i32, %arg1: memref<1x64x512xbf16, #tpu.memory_space<vmem>>, %arg2: memref<9x32x64xbf16, #tpu.memory_space<vmem>>, %arg3: memref<32x1xf32, #tpu.memory_space<vmem>>, %arg4: memref<4x32xf32, #tpu.memory_space<vmem>>, %arg5: memref<4x1xf32, #tpu.memory_space<vmem>>, %arg6: memref<1x4x384xf32, #tpu.memory_space<vmem>>) attributes {dimension_semantics = [#tpu.dimension_semantics<parallel>], iteration_bounds = array<i64: 2>, scalar_prefetch = 0 : i64, scratch_operands = 0 : i64, tpu.core_type = #tpu.core_type<tc>, window_params = [{transform_indices = @transform_0, window_bounds = array<i64: 1, 64, 512>}, {pipeline_mode = #tpu.pipeline_mode<synchronous>, transform_indices = @transform_1, window_bounds = array<i64: 9, 32, 64>}, {pipeline_mode = #tpu.pipeline_mode<synchronous>, transform_indices = @transform_2, window_bounds = array<i64: 32, 1>}, {pipeline_mode = #tpu.pipeline_mode<synchronous>, transform_indices = @transform_3, window_bounds = array<i64: 4, 32>}, {pipeline_mode = #tpu.pipeline_mode<synchronous>, transform_indices = @transform_4, window_bounds = array<i64: 4, 1>}, {transform_indices = @transform_5, window_bounds = array<i64: 1, 4, 384>}]} {
    %c0 = arith.constant 0 : index
    %c0_0 = arith.constant 0 : index
    %c0_1 = arith.constant 0 : index
    %0 = vector.load %arg1[%c0, %c0_0, %c0_1] : memref<1x64x512xbf16, #tpu.memory_space<vmem>>, vector<1x64x512xbf16>
    %1 = vector.shape_cast %0 : vector<1x64x512xbf16> to vector<64x512xbf16>
    %c0_2 = arith.constant 0 : index
    %c0_3 = arith.constant 0 : index
    %2 = vector.load %arg3[%c0_2, %c0_3] : memref<32x1xf32, #tpu.memory_space<vmem>>, vector<32x1xf32>
    %3 = vector.shape_cast %2 : vector<32x1xf32> to vector<32x1xf32>
    %4 = vector.broadcast %3 : vector<32x1xf32> to vector<32x384xf32>
    %c0_4 = arith.constant 0 : index
    %c0_5 = arith.constant 0 : index
    %c0_6 = arith.constant 0 : index
    %5 = vector.load %arg2[%c0_4, %c0_5, %c0_6] : memref<9x32x64xbf16, #tpu.memory_space<vmem>>, vector<1x32x64xbf16>
    %6 = vector.shape_cast %5 : vector<1x32x64xbf16> to vector<32x64xbf16>
    %7 = vector.extract_strided_slice %1 {offsets = [0, 0], sizes = [64, 384], strides = [1, 1]} : vector<64x512xbf16> to vector<64x384xbf16>
    %cst = arith.constant dense<0.000000e+00> : vector<32x384xf32>
    %8 = tpu.matmul %6, %7, %cst {dimension_numbers = #tpu.dot_dimension_numbers<[1], [0], [0], [1], [0, 0, 1, 1], [], []>} : vector<32x64xbf16>, vector<64x384xbf16>, vector<32x384xf32> -> vector<32x384xf32>
    %9 = arith.addf %4, %8 : vector<32x384xf32>
    %c1 = arith.constant 1 : index
    %c0_7 = arith.constant 0 : index
    %c0_8 = arith.constant 0 : index
    %10 = vector.load %arg2[%c1, %c0_7, %c0_8] : memref<9x32x64xbf16, #tpu.memory_space<vmem>>, vector<1x32x64xbf16>
    %11 = vector.shape_cast %10 : vector<1x32x64xbf16> to vector<32x64xbf16>
    %12 = vector.extract_strided_slice %1 {offsets = [0, 1], sizes = [64, 384], strides = [1, 1]} : vector<64x512xbf16> to vector<64x384xbf16>
    %cst_9 = arith.constant dense<0.000000e+00> : vector<32x384xf32>
    %13 = tpu.matmul %11, %12, %cst_9 {dimension_numbers = #tpu.dot_dimension_numbers<[1], [0], [0], [1], [0, 0, 1, 1], [], []>} : vector<32x64xbf16>, vector<64x384xbf16>, vector<32x384xf32> -> vector<32x384xf32>
    %14 = arith.addf %9, %13 : vector<32x384xf32>
    %c2 = arith.constant 2 : index
    %c0_10 = arith.constant 0 : index
    %c0_11 = arith.constant 0 : index
    %15 = vector.load %arg2[%c2, %c0_10, %c0_11] : memref<9x32x64xbf16, #tpu.memory_space<vmem>>, vector<1x32x64xbf16>
    %16 = vector.shape_cast %15 : vector<1x32x64xbf16> to vector<32x64xbf16>
    %17 = vector.extract_strided_slice %1 {offsets = [0, 2], sizes = [64, 384], strides = [1, 1]} : vector<64x512xbf16> to vector<64x384xbf16>
    %cst_12 = arith.constant dense<0.000000e+00> : vector<32x384xf32>
    %18 = tpu.matmul %16, %17, %cst_12 {dimension_numbers = #tpu.dot_dimension_numbers<[1], [0], [0], [1], [0, 0, 1, 1], [], []>} : vector<32x64xbf16>, vector<64x384xbf16>, vector<32x384xf32> -> vector<32x384xf32>
    %19 = arith.addf %14, %18 : vector<32x384xf32>
    %c3 = arith.constant 3 : index
    %c0_13 = arith.constant 0 : index
    %c0_14 = arith.constant 0 : index
    %20 = vector.load %arg2[%c3, %c0_13, %c0_14] : memref<9x32x64xbf16, #tpu.memory_space<vmem>>, vector<1x32x64xbf16>
    %21 = vector.shape_cast %20 : vector<1x32x64xbf16> to vector<32x64xbf16>
    %22 = vector.extract_strided_slice %1 {offsets = [0, 18], sizes = [64, 384], strides = [1, 1]} : vector<64x512xbf16> to vector<64x384xbf16>
    %cst_15 = arith.constant dense<0.000000e+00> : vector<32x384xf32>
    %23 = tpu.matmul %21, %22, %cst_15 {dimension_numbers = #tpu.dot_dimension_numbers<[1], [0], [0], [1], [0, 0, 1, 1], [], []>} : vector<32x64xbf16>, vector<64x384xbf16>, vector<32x384xf32> -> vector<32x384xf32>
    %24 = arith.addf %19, %23 : vector<32x384xf32>
    %c4 = arith.constant 4 : index
    %c0_16 = arith.constant 0 : index
    %c0_17 = arith.constant 0 : index
    %25 = vector.load %arg2[%c4, %c0_16, %c0_17] : memref<9x32x64xbf16, #tpu.memory_space<vmem>>, vector<1x32x64xbf16>
    %26 = vector.shape_cast %25 : vector<1x32x64xbf16> to vector<32x64xbf16>
    %27 = vector.extract_strided_slice %1 {offsets = [0, 19], sizes = [64, 384], strides = [1, 1]} : vector<64x512xbf16> to vector<64x384xbf16>
    %cst_18 = arith.constant dense<0.000000e+00> : vector<32x384xf32>
    %28 = tpu.matmul %26, %27, %cst_18 {dimension_numbers = #tpu.dot_dimension_numbers<[1], [0], [0], [1], [0, 0, 1, 1], [], []>} : vector<32x64xbf16>, vector<64x384xbf16>, vector<32x384xf32> -> vector<32x384xf32>
    %29 = arith.addf %24, %28 : vector<32x384xf32>
    %c5 = arith.constant 5 : index
    %c0_19 = arith.constant 0 : index
    %c0_20 = arith.constant 0 : index
    %30 = vector.load %arg2[%c5, %c0_19, %c0_20] : memref<9x32x64xbf16, #tpu.memory_space<vmem>>, vector<1x32x64xbf16>
    %31 = vector.shape_cast %30 : vector<1x32x64xbf16> to vector<32x64xbf16>
    %32 = vector.extract_strided_slice %1 {offsets = [0, 20], sizes = [64, 384], strides = [1, 1]} : vector<64x512xbf16> to vector<64x384xbf16>
    %cst_21 = arith.constant dense<0.000000e+00> : vector<32x384xf32>
    %33 = tpu.matmul %31, %32, %cst_21 {dimension_numbers = #tpu.dot_dimension_numbers<[1], [0], [0], [1], [0, 0, 1, 1], [], []>} : vector<32x64xbf16>, vector<64x384xbf16>, vector<32x384xf32> -> vector<32x384xf32>
    %34 = arith.addf %29, %33 : vector<32x384xf32>
    %c6 = arith.constant 6 : index
    %c0_22 = arith.constant 0 : index
    %c0_23 = arith.constant 0 : index
    %35 = vector.load %arg2[%c6, %c0_22, %c0_23] : memref<9x32x64xbf16, #tpu.memory_space<vmem>>, vector<1x32x64xbf16>
    %36 = vector.shape_cast %35 : vector<1x32x64xbf16> to vector<32x64xbf16>
    %37 = vector.extract_strided_slice %1 {offsets = [0, 36], sizes = [64, 384], strides = [1, 1]} : vector<64x512xbf16> to vector<64x384xbf16>
    %cst_24 = arith.constant dense<0.000000e+00> : vector<32x384xf32>
    %38 = tpu.matmul %36, %37, %cst_24 {dimension_numbers = #tpu.dot_dimension_numbers<[1], [0], [0], [1], [0, 0, 1, 1], [], []>} : vector<32x64xbf16>, vector<64x384xbf16>, vector<32x384xf32> -> vector<32x384xf32>
    %39 = arith.addf %34, %38 : vector<32x384xf32>
    %c7 = arith.constant 7 : index
    %c0_25 = arith.constant 0 : index
    %c0_26 = arith.constant 0 : index
    %40 = vector.load %arg2[%c7, %c0_25, %c0_26] : memref<9x32x64xbf16, #tpu.memory_space<vmem>>, vector<1x32x64xbf16>
    %41 = vector.shape_cast %40 : vector<1x32x64xbf16> to vector<32x64xbf16>
    %42 = vector.extract_strided_slice %1 {offsets = [0, 37], sizes = [64, 384], strides = [1, 1]} : vector<64x512xbf16> to vector<64x384xbf16>
    %cst_27 = arith.constant dense<0.000000e+00> : vector<32x384xf32>
    %43 = tpu.matmul %41, %42, %cst_27 {dimension_numbers = #tpu.dot_dimension_numbers<[1], [0], [0], [1], [0, 0, 1, 1], [], []>} : vector<32x64xbf16>, vector<64x384xbf16>, vector<32x384xf32> -> vector<32x384xf32>
    %44 = arith.addf %39, %43 : vector<32x384xf32>
    %c8 = arith.constant 8 : index
    %c0_28 = arith.constant 0 : index
    %c0_29 = arith.constant 0 : index
    %45 = vector.load %arg2[%c8, %c0_28, %c0_29] : memref<9x32x64xbf16, #tpu.memory_space<vmem>>, vector<1x32x64xbf16>
    %46 = vector.shape_cast %45 : vector<1x32x64xbf16> to vector<32x64xbf16>
    %47 = vector.extract_strided_slice %1 {offsets = [0, 38], sizes = [64, 384], strides = [1, 1]} : vector<64x512xbf16> to vector<64x384xbf16>
    %cst_30 = arith.constant dense<0.000000e+00> : vector<32x384xf32>
    %48 = tpu.matmul %46, %47, %cst_30 {dimension_numbers = #tpu.dot_dimension_numbers<[1], [0], [0], [1], [0, 0, 1, 1], [], []>} : vector<32x64xbf16>, vector<64x384xbf16>, vector<32x384xf32> -> vector<32x384xf32>
    %49 = arith.addf %44, %48 : vector<32x384xf32>
    %cst_31 = arith.constant 0.000000e+00 : f32
    %50 = vector.broadcast %cst_31 : f32 to vector<32x384xf32>
    %51 = arith.maximumf %49, %50 : vector<32x384xf32>
    %c0_32 = arith.constant 0 : index
    %c0_33 = arith.constant 0 : index
    %52 = vector.load %arg4[%c0_32, %c0_33] : memref<4x32xf32, #tpu.memory_space<vmem>>, vector<4x32xf32>
    %cst_34 = arith.constant dense<0.000000e+00> : vector<4x384xf32>
    %53 = tpu.matmul %52, %51, %cst_34 {dimension_numbers = #tpu.dot_dimension_numbers<[1], [0], [0], [1], [0, 0, 1, 1], [], []>} : vector<4x32xf32>, vector<32x384xf32>, vector<4x384xf32> -> vector<4x384xf32>
    %c0_35 = arith.constant 0 : index
    %c0_36 = arith.constant 0 : index
    %54 = vector.load %arg5[%c0_35, %c0_36] : memref<4x1xf32, #tpu.memory_space<vmem>>, vector<4x1xf32>
    %55 = vector.broadcast %54 : vector<4x1xf32> to vector<4x384xf32>
    %56 = arith.addf %53, %55 : vector<4x384xf32>
    %cst_37 = arith.constant 5.000000e-01 : f32
    %57 = vector.broadcast %cst_37 : f32 to vector<4x384xf32>
    %58 = arith.mulf %57, %56 : vector<4x384xf32>
    %59 = math.tanh %58 : vector<4x384xf32>
    %cst_38 = arith.constant 5.000000e-01 : f32
    %60 = vector.broadcast %cst_38 : f32 to vector<4x384xf32>
    %61 = arith.mulf %60, %59 : vector<4x384xf32>
    %cst_39 = arith.constant 5.000000e-01 : f32
    %62 = vector.broadcast %cst_39 : f32 to vector<4x384xf32>
    %63 = arith.addf %61, %62 : vector<4x384xf32>
    %c0_40 = arith.constant 0 : index
    %c0_41 = arith.constant 0 : index
    %c0_42 = arith.constant 0 : index
    %64 = vector.load %arg6[%c0_40, %c0_41, %c0_42] : memref<1x4x384xf32, #tpu.memory_space<vmem>>, vector<1x4x384xf32>
    %65 = vector.shape_cast %64 : vector<1x4x384xf32> to vector<4x384xf32>
    %66 = vector.shape_cast %63 : vector<4x384xf32> to vector<1x4x384xf32>
    tpu.vector_store %arg6[%c0_40, %c0_41, %c0_42], %66 {strides = array<i32>} : memref<1x4x384xf32, #tpu.memory_space<vmem>>, vector<1x4x384xf32>,
    return
  }
  func.func @transform_0(%arg0: i32) -> (i32, i32, i32) {
    %c0_i32 = arith.constant 0 : i32
    %c0_i32_0 = arith.constant 0 : i32
    %c0_i32_1 = arith.constant 0 : i32
    return %arg0, %c0_i32, %c0_i32_0 : i32, i32, i32
  }
  func.func @transform_1(%arg0: i32) -> (i32, i32, i32) {
    %c0_i32 = arith.constant 0 : i32
    %c0_i32_0 = arith.constant 0 : i32
    %c0_i32_1 = arith.constant 0 : i32
    %c0_i32_2 = arith.constant 0 : i32
    return %c0_i32, %c0_i32_0, %c0_i32_1 : i32, i32, i32
  }
  func.func @transform_2(%arg0: i32) -> (i32, i32) {
    %c0_i32 = arith.constant 0 : i32
    %c0_i32_0 = arith.constant 0 : i32
    %c0_i32_1 = arith.constant 0 : i32
    return %c0_i32, %c0_i32_0 : i32, i32
  }
  func.func @transform_3(%arg0: i32) -> (i32, i32) {
    %c0_i32 = arith.constant 0 : i32
    %c0_i32_0 = arith.constant 0 : i32
    %c0_i32_1 = arith.constant 0 : i32
    return %c0_i32, %c0_i32_0 : i32, i32
  }
  func.func @transform_4(%arg0: i32) -> (i32, i32) {
    %c0_i32 = arith.constant 0 : i32
    %c0_i32_0 = arith.constant 0 : i32
    %c0_i32_1 = arith.constant 0 : i32
    return %c0_i32, %c0_i32_0 : i32, i32
  }
  func.func @transform_5(%arg0: i32) -> (i32, i32, i32) {
    %c0_i32 = arith.constant 0 : i32
    %c0_i32_0 = arith.constant 0 : i32
    %c0_i32_1 = arith.constant 0 : i32
    return %arg0, %c0_i32, %c0_i32_0 : i32, i32, i32
  }
}

</mosaic_0001>

<bundles_post_ra>
// kernel: outconv_forward.1
= control target key start
LH: loop header
LB: loop body
LE: loop exit
PB: predicated region body
PF: predicated region fallthrough
CT: control target
= control target key end

     0   :  { %s2786_s18 = smov 0   ;;  %s3325_s0 = inlined_call_operand.vmem [shape: bf16[2,64,512], index: 0, kind: input, shape index: {}]   ;;  %s3326_s1 = inlined_call_operand.vmem [shape: bf16[9,32,64], index: 1, kind: input, shape index: {}]   ;;  %s3327_s2 = inlined_call_operand.vmem [shape: f32[32,1], index: 2, kind: input, shape index: {}]   ;;  %s3328_s3 = inlined_call_operand.vmem [shape: f32[4,32], index: 3, kind: input, shape index: {}]   ;;  %s3329_s4 = inlined_call_operand.vmem [shape: f32[4,1], index: 4, kind: input, shape index: {}]   ;;  %s3330_s5 = inlined_call_operand.vmem [shape: f32[2,4,384], index: 5, kind: output, shape index: {}]  }
   0x1 LB: > { %s2250_s19 = sadd.s32 4294967295, %s2742_s18   ;;  %p2254_p0 = scmp.ge.s32.totalorder %s2742_s18, 1  ;;  %s2742_s18 = sphi %s2786_s18, %s15_s18  }
   0x2   : > { %p187_p1 = scmp.lt.s32.totalorder %s2742_s18, 3 }
   0x4   : > { %p188_p2 = pnand %p2254_p0, %p187_p1 }
   0x5   : > { %p215_p3 = scmp.lt.s32.totalorder (!%p188_p2), %s2250_s19, 1  ;;  %v2744_v0 = vmov (!%p188_p2), 0   ;;  %v2712_v1 = vld [vmem:[%s3326_s1] sm:$0xff] (!%p188_p2)   ;;  %vm344_vm0 = vcmask (!%p188_p2), 523264   ;;  %s2745_s26 = smov (!%p188_p2), 127   ;;  %v2713_v15 = vld [vmem:[%s3326_s1 + $0x8] sm:$0xff] (!%p188_p2)  }
   0x6   : > { %191 = sbr.rel (%p188_p2) target bundleno = 853 (0x355), region = 40  ;;  %383 = vmatprep.mubr.bf16.mxu0 (!%p188_p2), %v2744_v0  ;;  %2686 = vset.pattern.permute.xlu0 (!%p188_p2), %v2744_v0  ;;  %v2898_v17 = vld [vmem:[%s3326_s1 + $0x10] sm:$0xff] (!%p188_p2)   ;;  %s2746_s6 = smov (!%p188_p2), 126   ;;  %vm524_vm1 = vcmask (!%p188_p2), 1039360   ;;  %vm716_vm2 = vcmask (!%p188_p2), 1031168   ;;  %v2715_v54 = vld [vmem:[%s3326_s1 + $0x18] sm:$0xff] (!%p188_p2)  }
   0x7   : > { %2687 = vset.pattern.permute.xlu1 (!%p188_p2), %v2744_v0  ;;  %2432 = vmatprep.mubr.msk.bf16.mxu1 (!%p188_p2), %vm344_vm0, %v2712_v1  ;;  %s2747_s7 = smov (!%p188_p2), 110   ;;  %s2748_s8 = smov (!%p188_p2), 109   ;;  %v2716_v59 = vld [vmem:[%s3326_s1 + $0x20] sm:$0xff] (!%p188_p2)   ;;  %vm908_vm3 = vcmask (!%p188_p2), 900096   ;;  %vm1100_vm4 = vcmask (!%p188_p2), 891904   ;;  %vm1292_vm5 = vcmask (!%p188_p2), 883712  }
   0x8   : > { %s2749_s9 = smov (!%p188_p2), 108   ;;  %s2750_s12 = smov (!%p188_p2), 92   ;;  %vm1484_vm6 = vcmask (!%p188_p2), 752640   ;;  %vm1676_vm7 = vcmask (!%p188_p2), 744448   ;;  %vm1868_vm8 = vcmask (!%p188_p2), 736256   ;;  %vm2755_vm9 = vmmov (!%p188_p2), 0  }
   0x9   : > { %s2751_s17 = smov (!%p188_p2), 91   ;;  %s2752_s24 = smov (!%p188_p2), 90   ;;  %vm2032_vm10 = vcmask (!%p188_p2), 261120  }
   0xd   : > { %s3332_s19 = smov (!%p215_p3, %s2250_s19), 1 }
   0xe   : > { %s2364_s22 = sshll.u32 %s3332_s19, 7 }
   0xf   : > { %s2807_s25 = scalar_lea.vmem %s3325_s0, %s2364_s22 }
  0x10   : > { %v2810_v2 = vld [vmem:[%s2807_s25 + $0x4] ss:$16 sps:$4 sm:$0xff]   ;;  %v2813_v3 = vld [vmem:[%s2807_s25] ss:$16 sps:$4 sm:$0xff]   ;;  %v2818_v4 = vld [vmem:[%s2807_s25 + $0x8] ss:$16 sps:$4 sm:$0xff]  }
  0x11   : > { %494 = vrot.lane.b32.xlu0 %v2810_v2, %s2745_s26  ;;  %351 = vmatprep.subr.bf16.mxu0 %v2810_v2  ;;  %v2824_v5 = vld [vmem:[%s2807_s25 + $0x24] ss:$16 sps:$4 sm:$0xff]   ;;  %v2828_v6 = vld [vmem:[%s2807_s25 + $0x28] ss:$16 sps:$4 sm:$0xff]   ;;  %v2832_v7 = vld [vmem:[%s2807_s25 + $0x20] ss:$16 sps:$4 sm:$0xff]  }
  0x12   : > { %492 = vrot.lane.b32.xlu1 %v2813_v3, %s2745_s26  ;;  %352 = vmatpush1.bf16.msra.mxu0 %v2813_v3  ;;  %v2839_v8 = vld [vmem:[%s2807_s25 + $0x44] ss:$16 sps:$4 sm:$0xff]   ;;  %v2846_v9 = vld [vmem:[%s2807_s25 + $0x48] ss:$16 sps:$4 sm:$0xff]   ;;  %v2850_v10 = vld [vmem:[%s2807_s25 + $0x40] ss:$16 sps:$4 sm:$0xff]  }
  0x13   : > { %2424 = vmatprep.subr.bf16.mxu1 %v2818_v4  ;;  %353 = vmatprep.subr.bf16.mxu0 %v2824_v5  ;;  %v2856_v11 = vld [vmem:[%s2807_s25 + $0xc] ss:$16 sps:$4 sm:$0xff]   ;;  %v2859_v12 = vld [vmem:[%s2807_s25 + $0x64] ss:$16 sps:$4 sm:$0xff]   ;;  %v2862_v13 = vld [vmem:[%s2807_s25 + $0x68] ss:$16 sps:$4 sm:$0xff]  }
  0x14   : > { %2425 = vmatpush3.bf16.msra.mxu1 %v2818_v4  ;;  %v2868_v14 = vld [vmem:[%s2807_s25 + $0x60] ss:$16 sps:$4 sm:$0xff]   ;;  %v2883_v16 = vld [vmem:[%s2807_s25 + $0x2c] ss:$16 sps:$4 sm:$0xff]  }
  0x15   : > { %496 = vrot.lane.b32.xlu0 %v2818_v4, %s2745_s26  ;;  %2426 = vmatprep.subr.bf16.mxu1 %v2828_v6  ;;  %v2907_v18 = vld [vmem:[%s2807_s25 + $0x4c] ss:$16 sps:$4 sm:$0xff]  }
  0x16   : > { %502 = vrot.lane.b32.xlu1 %v2824_v5, %s2745_s26  ;;  %354 = vmatpush1.bf16.msra.mxu0 %v2832_v7  ;;  %v2918_v19 = vld [vmem:[%s2807_s25 + $0x6c] ss:$16 sps:$4 sm:$0xff]  }
  0x17   : > { %355 = vmatprep.subr.bf16.mxu0 %v2839_v8 }
  0x18   : > { %2427 = vmatpush3.bf16.msra.mxu1 %v2828_v6 }
  0x19   : > { %504 = vrot.lane.b32.xlu0 %v2828_v6, %s2745_s26  ;;  %2428 = vmatprep.subr.bf16.mxu1 %v2846_v9 }
  0x1a   : > { %500 = vrot.lane.b32.xlu1 %v2832_v7, %s2745_s26  ;;  %356 = vmatpush1.bf16.msra.mxu0 %v2850_v10 }
  0x1b   : > { %357 = vmatprep.subr.bf16.mxu0 %v2859_v12 }
  0x1c   : > { %2429 = vmatpush3.bf16.msra.mxu1 %v2846_v9 }
  0x1d   : > { %498 = vrot.lane.b32.xlu0 %v2856_v11, %s2745_s26  ;;  %2430 = vmatprep.subr.bf16.mxu1 %v2862_v13 }
  0x1e   : > { %510 = vrot.lane.b32.xlu1 %v2839_v8, %s2745_s26  ;;  %358 = vmatpush1.bf16.msra.mxu0 %v2868_v14 }
  0x20   : > { %2431 = vmatpush3.bf16.msra.mxu1 %v2862_v13 }
  0x21   : > { %512 = vrot.lane.b32.xlu0 %v2846_v9, %s2745_s26  ;;  %2272 = vmatmul.mubr.msk.bf16.vlgmr.msra.gmra.mrb[0].mxu0 %vm344_vm0, %v2712_v1 }
  0x22   : > { %508 = vrot.lane.b32.xlu1 %v2850_v10, %s2745_s26  ;;  %393 = vmatprep.mubr.bf16.mxu0 %v2744_v0 }
  0x23   : > { %2433 = vmatmul.mubr.msk.bf16.vlgmr.msra.gmra.mrb[0].mxu1 %vm344_vm0, %v2713_v15 }
  0x24   : > { %2444 = vmatprep.mubr.msk.bf16.mxu1 %vm344_vm0, %v2898_v17 }
  0x25   : > { %506 = vrot.lane.b32.xlu0 %v2883_v16, %s2745_s26 }
  0x26   : > { %518 = vrot.lane.b32.xlu1 %v2859_v12, %s2745_s26 }
  0x29   : > { %520 = vrot.lane.b32.xlu0 %v2862_v13, %s2745_s26  ;;  %2273 = vmatmul.mubr.msk.bf16.gmra.mrb[4].mxu0 %vm344_vm0, %v2713_v15 }
  0x2a   : > { %516 = vrot.lane.b32.xlu1 %v2868_v14, %s2745_s26  ;;  %587 = vmatprep.mubr.bf16.mxu0 %v2744_v0 }
  0x2d   : > { %514 = vrot.lane.b32.xlu0 %v2907_v18, %s2745_s26 }
  0x2e   : > { %686 = vrot.lane.b32.xlu1 %v2810_v2, %s2746_s6 }
  0x31   : > { %688 = vrot.lane.b32.xlu0 %v2818_v4, %s2746_s6 }
  0x32   : > { %684 = vrot.lane.b32.xlu1 %v2813_v3, %s2746_s6 }
  0x35   : > { %522 = vrot.lane.b32.xlu0 %v2918_v19, %s2745_s26 }
  0x36   : > { %694 = vrot.lane.b32.xlu1 %v2824_v5, %s2746_s6 }
  0x39   : > { %696 = vrot.lane.b32.xlu0 %v2828_v6, %s2746_s6 }
  0x3a   : > { %692 = vrot.lane.b32.xlu1 %v2832_v7, %s2746_s6 }
  0x3d   : > { %690 = vrot.lane.b32.xlu0 %v2856_v11, %s2746_s6 }
  0x3e   : > { %702 = vrot.lane.b32.xlu1 %v2839_v8, %s2746_s6 }
  0x41   : > { %704 = vrot.lane.b32.xlu0 %v2846_v9, %s2746_s6 }
  0x42   : > { %700 = vrot.lane.b32.xlu1 %v2850_v10, %s2746_s6 }
  0x45   : > { %698 = vrot.lane.b32.xlu0 %v2883_v16, %s2746_s6 }
  0x46   : > { %710 = vrot.lane.b32.xlu1 %v2859_v12, %s2746_s6 }
  0x49   : > { %712 = vrot.lane.b32.xlu0 %v2862_v13, %s2746_s6 }
  0x4a   : > { %708 = vrot.lane.b32.xlu1 %v2868_v14, %s2746_s6 }
  0x4d   : > { %706 = vrot.lane.b32.xlu0 %v2907_v18, %s2746_s6 }
  0x4e   : > { %878 = vrot.lane.b32.xlu1 %v2810_v2, %s2747_s7 }
  0x51   : > { %880 = vrot.lane.b32.xlu0 %v2818_v4, %s2747_s7 }
  0x52   : > { %876 = vrot.lane.b32.xlu1 %v2813_v3, %s2747_s7 }
  0x55   : > { %714 = vrot.lane.b32.xlu0 %v2918_v19, %s2746_s6 }
  0x56   : > { %886 = vrot.lane.b32.xlu1 %v2824_v5, %s2747_s7 }
  0x59   : > { %888 = vrot.lane.b32.xlu0 %v2828_v6, %s2747_s7 }
  0x5a   : > { %884 = vrot.lane.b32.xlu1 %v2832_v7, %s2747_s7 }
  0x5d   : > { %882 = vrot.lane.b32.xlu0 %v2856_v11, %s2747_s7 }
  0x5e   : > { %894 = vrot.lane.b32.xlu1 %v2839_v8, %s2747_s7 }
  0x61   : > { %896 = vrot.lane.b32.xlu0 %v2846_v9, %s2747_s7 }
  0x62   : > { %892 = vrot.lane.b32.xlu1 %v2850_v10, %s2747_s7 }
  0x65   : > { %890 = vrot.lane.b32.xlu0 %v2883_v16, %s2747_s7 }
  0x66   : > { %902 = vrot.lane.b32.xlu1 %v2859_v12, %s2747_s7 }
  0x69   : > { %904 = vrot.lane.b32.xlu0 %v2862_v13, %s2747_s7 }
  0x6a   : > { %900 = vrot.lane.b32.xlu1 %v2868_v14, %s2747_s7 }
  0x6d   : > { %898 = vrot.lane.b32.xlu0 %v2907_v18, %s2747_s7 }
  0x6e   : > { %1070 = vrot.lane.b32.xlu1 %v2810_v2, %s2748_s8 }
  0x71   : > { %1072 = vrot.lane.b32.xlu0 %v2818_v4, %s2748_s8 }
  0x72   : > { %1068 = vrot.lane.b32.xlu1 %v2813_v3, %s2748_s8 }
  0x75   : > { %906 = vrot.lane.b32.xlu0 %v2918_v19, %s2747_s7 }
  0x76   : > { %1078 = vrot.lane.b32.xlu1 %v2824_v5, %s2748_s8 }
  0x79   : > { %1080 = vrot.lane.b32.xlu0 %v2828_v6, %s2748_s8 }
  0x7a   : > { %1076 = vrot.lane.b32.xlu1 %v2832_v7, %s2748_s8 }
  0x7d   : > { %1074 = vrot.lane.b32.xlu0 %v2856_v11, %s2748_s8 }
  0x7e   : > { %1086 = vrot.lane.b32.xlu1 %v2839_v8, %s2748_s8 }
  0x81   : > { %1088 = vrot.lane.b32.xlu0 %v2846_v9, %s2748_s8 }
  0x82   : > { %1084 = vrot.lane.b32.xlu1 %v2850_v10, %s2748_s8 }
  0x83   : > { %v495_v20 = vpop.permute.xlu0 %494 }
  0x84   : > { %v493_v21 = vpop.permute.xlu1 %492 }
  0x85   : > { %1082 = vrot.lane.b32.xlu0 %v2883_v16, %s2748_s8  ;;  %v525_v25 = vsel %vm524_vm1, %v493_v21, %v495_v20 }
  0x86   : > { %1094 = vrot.lane.b32.xlu1 %v2859_v12, %s2748_s8 }
  0x87   : > { %v497_v22 = vpop.permute.xlu0 %496 }
  0x88   : > { %v503_v23 = vpop.permute.xlu1 %502  ;;  %v526_v24 = vsel %vm524_vm1, %v495_v20, %v497_v22 }
  0x89   : > { %1096 = vrot.lane.b32.xlu0 %v2862_v13, %s2748_s8  ;;  %555 = vmatprep.subr.bf16.mxu0 %v526_v24 }
  0x8a   : > { %1092 = vrot.lane.b32.xlu1 %v2868_v14, %s2748_s8  ;;  %556 = vmatpush1.bf16.msra.mxu0 %v525_v25 }
  0x8b   : > { %v505_v26 = vpop.permute.xlu0 %504 }
  0x8c   : > { %v501_v27 = vpop.permute.xlu1 %500  ;;  %v529_v28 = vsel %vm524_vm1, %v503_v23, %v505_v26 }
  0x8d   : > { %v528_v29 = vsel %vm524_vm1, %v501_v27, %v503_v23  ;;  %1090 = vrot.lane.b32.xlu0 %v2907_v18, %s2748_s8  ;;  %557 = vmatprep.subr.bf16.mxu0 %v529_v28 }
  0x8e   : > { %1262 = vrot.lane.b32.xlu1 %v2810_v2, %s2749_s9  ;;  %558 = vmatpush1.bf16.msra.mxu0 %v528_v29 }
  0x8f   : > { %v499_v30 = vpop.permute.xlu0 %498 }
  0x90   : > { %v511_v31 = vpop.permute.xlu1 %510  ;;  %v527_v32 = vsel %vm524_vm1, %v497_v22, %v499_v30 }
  0x91   : > { %1264 = vrot.lane.b32.xlu0 %v2818_v4, %s2749_s9  ;;  %2436 = vmatprep.subr.bf16.mxu1 %v527_v32 }
  0x92   : > { %1260 = vrot.lane.b32.xlu1 %v2813_v3, %s2749_s9  ;;  %2437 = vmatpush3.bf16.msra.mxu1 %v527_v32 }
  0x93   : > { %v513_v33 = vpop.permute.xlu0 %512 }
  0x94   : > { %v509_v34 = vpop.permute.xlu1 %508  ;;  %v532_v35 = vsel %vm524_vm1, %v511_v31, %v513_v33 }
  0x95   : > { %v531_v36 = vsel %vm524_vm1, %v509_v34, %v511_v31  ;;  %1098 = vrot.lane.b32.xlu0 %v2918_v19, %s2748_s8  ;;  %559 = vmatprep.subr.bf16.mxu0 %v532_v35 }
  0x96   : > { %1270 = vrot.lane.b32.xlu1 %v2824_v5, %s2749_s9  ;;  %560 = vmatpush1.bf16.msra.mxu0 %v531_v36 }
  0x97   : > { %v507_v37 = vpop.permute.xlu0 %506 }
  0x98   : > { %v519_v38 = vpop.permute.xlu1 %518  ;;  %v530_v39 = vsel %vm524_vm1, %v505_v26, %v507_v37  ;;  %v2717_v37 = vld [vmem:[%s3326_s1 + $0x28] sm:$0xff]  }
  0x99   : > { %1272 = vrot.lane.b32.xlu0 %v2828_v6, %s2749_s9  ;;  %2438 = vmatprep.subr.bf16.mxu1 %v530_v39 }
  0x9a   : > { %1268 = vrot.lane.b32.xlu1 %v2832_v7, %s2749_s9  ;;  %2439 = vmatpush3.bf16.msra.mxu1 %v530_v39 }
  0x9b   : > { %v521_v40 = vpop.permute.xlu0 %520 }
  0x9c   : > { %v517_v41 = vpop.permute.xlu1 %516  ;;  %v535_v42 = vsel %vm524_vm1, %v519_v38, %v521_v40 }
  0x9d   : > { %v534_v43 = vsel %vm524_vm1, %v517_v41, %v519_v38  ;;  %1266 = vrot.lane.b32.xlu0 %v2856_v11, %s2749_s9  ;;  %561 = vmatprep.subr.bf16.mxu0 %v535_v42  ;;  %v2718_v42 = vld [vmem:[%s3326_s1 + $0x30] sm:$0xff]  }
  0x9e   : > { %1278 = vrot.lane.b32.xlu1 %v2839_v8, %s2749_s9  ;;  %562 = vmatpush1.bf16.msra.mxu0 %v534_v43 }
  0x9f   : > { %v515_v44 = vpop.permute.xlu0 %514 }
  0xa0   : > { %v687_v45 = vpop.permute.xlu1 %686  ;;  %v533_v46 = vsel %vm524_vm1, %v513_v33, %v515_v44 }
  0xa1   : > { %1280 = vrot.lane.b32.xlu0 %v2846_v9, %s2749_s9  ;;  %2440 = vmatprep.subr.bf16.mxu1 %v533_v46 }
  0xa2   : > { %1276 = vrot.lane.b32.xlu1 %v2850_v10, %s2749_s9  ;;  %2441 = vmatpush3.bf16.msra.mxu1 %v533_v46 }
  0xa3   : > { %v689_v47 = vpop.permute.xlu0 %688  ;;  %2286 = vmatmul.mubr.msk.bf16.vlgmr.msra.gmra.mrb[0].mxu0 %vm344_vm0, %v2898_v17 }
  0xa4   : > { %v685_v48 = vpop.permute.xlu1 %684  ;;  %v718_v49 = vsel %vm716_vm2, %v687_v45, %v689_v47  ;;  %597 = vmatprep.mubr.bf16.mxu0 %v2744_v0 }
  0xa5   : > { %v717_v50 = vsel %vm716_vm2, %v685_v48, %v687_v45  ;;  %1274 = vrot.lane.b32.xlu0 %v2883_v16, %s2749_s9  ;;  %747 = vmatprep.subr.bf16.mxu0 %v718_v49 }
  0xa6   : > { %1286 = vrot.lane.b32.xlu1 %v2859_v12, %s2749_s9  ;;  %748 = vmatpush1.bf16.msra.mxu0 %v717_v50 }
  0xa7   : > { %v523_v51 = vpop.permute.xlu0 %522 }
  0xa8   : > { %v695_v52 = vpop.permute.xlu1 %694  ;;  %v536_v53 = vsel %vm524_vm1, %v521_v40, %v523_v51 }
  0xa9   : > { %1288 = vrot.lane.b32.xlu0 %v2862_v13, %s2749_s9  ;;  %2442 = vmatprep.subr.bf16.mxu1 %v536_v53 }
  0xaa   : > { %1284 = vrot.lane.b32.xlu1 %v2868_v14, %s2749_s9  ;;  %2443 = vmatpush3.bf16.msra.mxu1 %v536_v53 }
  0xab   : > { %v697_v55 = vpop.permute.xlu0 %696  ;;  %2287 = vmatmul.mubr.msk.bf16.gmra.mrb[4].mxu0 %vm344_vm0, %v2715_v54 }
  0xac   : > { %v693_v56 = vpop.permute.xlu1 %692  ;;  %v721_v57 = vsel %vm716_vm2, %v695_v52, %v697_v55  ;;  %779 = vmatprep.mubr.bf16.mxu0 %v2744_v0 }
  0xad   : > { %v720_v58 = vsel %vm716_vm2, %v693_v56, %v695_v52  ;;  %1282 = vrot.lane.b32.xlu0 %v2907_v18, %s2749_s9  ;;  %749 = vmatprep.subr.bf16.mxu0 %v721_v57 }
  0xae   : > { %1454 = vrot.lane.b32.xlu1 %v2810_v2, %s2750_s12  ;;  %750 = vmatpush1.bf16.msra.mxu0 %v720_v58 }
  0xaf   : > { %v691_v60 = vpop.permute.xlu0 %690  ;;  %2445 = vmatmul.mubr.msk.bf16.vlgmr.msra.gmra.mrb[0].mxu1 %vm344_vm0, %v2715_v54 }
  0xb0   : > { %v703_v61 = vpop.permute.xlu1 %702  ;;  %v719_v62 = vsel %vm716_vm2, %v689_v47, %v691_v60  ;;  %2456 = vmatprep.mubr.msk.bf16.mxu1 %vm344_vm0, %v2716_v59 }
  0xb1   : > { %1456 = vrot.lane.b32.xlu0 %v2818_v4, %s2750_s12  ;;  %2448 = vmatprep.subr.bf16.mxu1 %v719_v62 }
  0xb2   : > { %1452 = vrot.lane.b32.xlu1 %v2813_v3, %s2750_s12  ;;  %2449 = vmatpush3.bf16.msra.mxu1 %v719_v62 }
  0xb3   : > { %v705_v63 = vpop.permute.xlu0 %704 }
  0xb4   : > { %v701_v1 = vpop.permute.xlu1 %700  ;;  %v724_v15 = vsel %vm716_vm2, %v703_v61, %v705_v63 }
  0xb5   : > { %v723_v17 = vsel %vm716_vm2, %v701_v1, %v703_v61  ;;  %1290 = vrot.lane.b32.xlu0 %v2918_v19, %s2749_s9  ;;  %751 = vmatprep.subr.bf16.mxu0 %v724_v15  ;;  %s2665_s9 = smul.u32 12, %s3332_s19 }
  0xb6   : > { %1462 = vrot.lane.b32.xlu1 %v2824_v5, %s2750_s12  ;;  %752 = vmatpush1.bf16.msra.mxu0 %v723_v17 }
  0xb7   : > { %v699_v20 = vpop.permute.xlu0 %698 }
  0xb8   : > { %v711_v21 = vpop.permute.xlu1 %710  ;;  %v722_v22 = vsel %vm716_vm2, %v697_v55, %v699_v20  ;;  %v2719_v20 = vld [vmem:[%s3326_s1 + $0x38] sm:$0xff]  }
  0xb9   : > { %1464 = vrot.lane.b32.xlu0 %v2828_v6, %s2750_s12  ;;  %2450 = vmatprep.subr.bf16.mxu1 %v722_v22 }
  0xba   : > { %1460 = vrot.lane.b32.xlu1 %v2832_v7, %s2750_s12  ;;  %2451 = vmatpush3.bf16.msra.mxu1 %v722_v22 }
  0xbb   : > { %v713_v23 = vpop.permute.xlu0 %712 }
  0xbc   : > { %v709_v24 = vpop.permute.xlu1 %708  ;;  %v727_v25 = vsel %vm716_vm2, %v711_v21, %v713_v23 }
  0xbd   : > { %v726_v26 = vsel %vm716_vm2, %v709_v24, %v711_v21  ;;  %1458 = vrot.lane.b32.xlu0 %v2856_v11, %s2750_s12  ;;  %753 = vmatprep.subr.bf16.mxu0 %v727_v25  ;;  %v2720_v25 = vld [vmem:[%s3326_s1 + $0x40] sm:$0xff]  }
  0xbe   : > { %1470 = vrot.lane.b32.xlu1 %v2839_v8, %s2750_s12  ;;  %754 = vmatpush1.bf16.msra.mxu0 %v726_v26 }
  0xbf   : > { %v707_v27 = vpop.permute.xlu0 %706 }
  0xc0   : > { %v879_v28 = vpop.permute.xlu1 %878  ;;  %v725_v29 = vsel %vm716_vm2, %v705_v63, %v707_v27 }
  0xc1   : > { %1472 = vrot.lane.b32.xlu0 %v2846_v9, %s2750_s12  ;;  %2452 = vmatprep.subr.bf16.mxu1 %v725_v29 }
  0xc2   : > { %1468 = vrot.lane.b32.xlu1 %v2850_v10, %s2750_s12  ;;  %2453 = vmatpush3.bf16.msra.mxu1 %v725_v29 }
  0xc3   : > { %v881_v30 = vpop.permute.xlu0 %880  ;;  %2296 = vmatmul.mubr.msk.bf16.vlgmr.msra.gmra.mrb[0].mxu0 %vm344_vm0, %v2716_v59 }
  0xc4   : > { %v877_v31 = vpop.permute.xlu1 %876  ;;  %v910_v32 = vsel %vm908_vm3, %v879_v28, %v881_v30  ;;  %789 = vmatprep.mubr.bf16.mxu0 %v2744_v0 }
  0xc5   : > { %v909_v33 = vsel %vm908_vm3, %v877_v31, %v879_v28  ;;  %1466 = vrot.lane.b32.xlu0 %v2883_v16, %s2750_s12  ;;  %939 = vmatprep.subr.bf16.mxu0 %v910_v32 }
  0xc6   : > { %1478 = vrot.lane.b32.xlu1 %v2859_v12, %s2750_s12  ;;  %940 = vmatpush1.bf16.msra.mxu0 %v909_v33 }
  0xc7   : > { %v715_v34 = vpop.permute.xlu0 %714 }
  0xc8   : > { %v887_v35 = vpop.permute.xlu1 %886  ;;  %v728_v36 = vsel %vm716_vm2, %v713_v23, %v715_v34 }
  0xc9   : > { %1480 = vrot.lane.b32.xlu0 %v2862_v13, %s2750_s12  ;;  %2454 = vmatprep.subr.bf16.mxu1 %v728_v36 }
  0xca   : > { %1476 = vrot.lane.b32.xlu1 %v2868_v14, %s2750_s12  ;;  %2455 = vmatpush3.bf16.msra.mxu1 %v728_v36 }
  0xcb   : > { %v889_v38 = vpop.permute.xlu0 %888  ;;  %2297 = vmatmul.mubr.msk.bf16.gmra.mrb[4].mxu0 %vm344_vm0, %v2717_v37 }
  0xcc   : > { %v885_v39 = vpop.permute.xlu1 %884  ;;  %v913_v40 = vsel %vm908_vm3, %v887_v35, %v889_v38  ;;  %971 = vmatprep.mubr.bf16.mxu0 %v2744_v0 }
  0xcd   : > { %v912_v41 = vsel %vm908_vm3, %v885_v39, %v887_v35  ;;  %1474 = vrot.lane.b32.xlu0 %v2907_v18, %s2750_s12  ;;  %941 = vmatprep.subr.bf16.mxu0 %v913_v40  ;;  %v2721_v40 = vld [vmem:[%s3326_s1 + $0x48] sm:$0xff]  }
  0xce   : > { %1646 = vrot.lane.b32.xlu1 %v2810_v2, %s2751_s17  ;;  %942 = vmatpush1.bf16.msra.mxu0 %v912_v41 }
  0xcf   : > { %v883_v43 = vpop.permute.xlu0 %882  ;;  %2457 = vmatmul.mubr.msk.bf16.vlgmr.msra.gmra.mrb[0].mxu1 %vm344_vm0, %v2717_v37 }
  0xd0   : > { %v895_v44 = vpop.permute.xlu1 %894  ;;  %v911_v45 = vsel %vm908_vm3, %v881_v30, %v883_v43  ;;  %2468 = vmatprep.mubr.msk.bf16.mxu1 %vm344_vm0, %v2718_v42 }
  0xd1   : > { %1648 = vrot.lane.b32.xlu0 %v2818_v4, %s2751_s17  ;;  %2460 = vmatprep.subr.bf16.mxu1 %v911_v45 }
  0xd2   : > { %1644 = vrot.lane.b32.xlu1 %v2813_v3, %s2751_s17  ;;  %2461 = vmatpush3.bf16.msra.mxu1 %v911_v45 }
  0xd3   : > { %v897_v46 = vpop.permute.xlu0 %896 }
  0xd4   : > { %v893_v47 = vpop.permute.xlu1 %892  ;;  %v916_v48 = vsel %vm908_vm3, %v895_v44, %v897_v46 }
  0xd5   : > { %v915_v49 = vsel %vm908_vm3, %v893_v47, %v895_v44  ;;  %1482 = vrot.lane.b32.xlu0 %v2918_v19, %s2750_s12  ;;  %943 = vmatprep.subr.bf16.mxu0 %v916_v48  ;;  %v244_v47 = vld [vmem:[%s3327_s2 + $0x10] sm:$0xff]  ;;  %s224_s12 = scalar_lea.vmem %s3330_s5, %s2665_s9 }
  0xd6   : > { %1654 = vrot.lane.b32.xlu1 %v2824_v5, %s2751_s17  ;;  %944 = vmatpush1.bf16.msra.mxu0 %v915_v49 }
  0xd7   : > { %v891_v50 = vpop.permute.xlu0 %890 }
  0xd8   : > { %v903_v51 = vpop.permute.xlu1 %902  ;;  %v914_v52 = vsel %vm908_vm3, %v889_v38, %v891_v50 }
  0xd9   : > { %1656 = vrot.lane.b32.xlu0 %v2828_v6, %s2751_s17  ;;  %2462 = vmatprep.subr.bf16.mxu1 %v914_v52 }
  0xda   : > { %1652 = vrot.lane.b32.xlu1 %v2832_v7, %s2751_s17  ;;  %2463 = vmatpush3.bf16.msra.mxu1 %v914_v52  ;;  %v2026_v52 = vld [vmem:[%s3329_s4] sm:$0xf] }
  0xdb   : > { %v905_v53 = vpop.permute.xlu0 %904 }
  0xdc   : > { %v901_v54 = vpop.permute.xlu1 %900  ;;  %v919_v55 = vsel %vm908_vm3, %v903_v51, %v905_v53 }
  0xdd   : > { %v918_v56 = vsel %vm908_vm3, %v901_v54, %v903_v51  ;;  %1650 = vrot.lane.b32.xlu0 %v2856_v11, %s2751_s17  ;;  %945 = vmatprep.subr.bf16.mxu0 %v919_v55 }
  0xde   : > { %1662 = vrot.lane.b32.xlu1 %v2839_v8, %s2751_s17  ;;  %946 = vmatpush1.bf16.msra.mxu0 %v918_v56 }
  0xdf   : > { %v899_v57 = vpop.permute.xlu0 %898 }
  0xe0   : > { %v1071_v58 = vpop.permute.xlu1 %1070  ;;  %v917_v59 = vsel %vm908_vm3, %v897_v46, %v899_v57 }
  0xe1   : > { %1664 = vrot.lane.b32.xlu0 %v2846_v9, %s2751_s17  ;;  %2464 = vmatprep.subr.bf16.mxu1 %v917_v59 }
  0xe2   : > { %1660 = vrot.lane.b32.xlu1 %v2850_v10, %s2751_s17  ;;  %2465 = vmatpush3.bf16.msra.mxu1 %v917_v59 }
  0xe3   : > { %v1073_v60 = vpop.permute.xlu0 %1072  ;;  %2306 = vmatmul.mubr.msk.bf16.vlgmr.msra.gmra.mrb[0].mxu0 %vm344_vm0, %v2718_v42 }
  0xe4   : > { %v1069_v61 = vpop.permute.xlu1 %1068  ;;  %v1102_v62 = vsel %vm1100_vm4, %v1071_v58, %v1073_v60  ;;  %981 = vmatprep.mubr.bf16.mxu0 %v2744_v0 }
  0xe5   : > { %v1101_v63 = vsel %vm1100_vm4, %v1069_v61, %v1071_v58  ;;  %1658 = vrot.lane.b32.xlu0 %v2883_v16, %s2751_s17  ;;  %1131 = vmatprep.subr.bf16.mxu0 %v1102_v62 }
  0xe6   : > { %1670 = vrot.lane.b32.xlu1 %v2859_v12, %s2751_s17  ;;  %1132 = vmatpush1.bf16.msra.mxu0 %v1101_v63 }
  0xe7   : > { %v907_v1 = vpop.permute.xlu0 %906 }
  0xe8   : > { %v1079_v15 = vpop.permute.xlu1 %1078  ;;  %v920_v17 = vsel %vm908_vm3, %v905_v53, %v907_v1 }
  0xe9   : > { %1672 = vrot.lane.b32.xlu0 %v2862_v13, %s2751_s17  ;;  %2466 = vmatprep.subr.bf16.mxu1 %v920_v17 }
  0xea   : > { %1668 = vrot.lane.b32.xlu1 %v2868_v14, %s2751_s17  ;;  %2467 = vmatpush3.bf16.msra.mxu1 %v920_v17 }
  0xeb   : > { %v1081_v21 = vpop.permute.xlu0 %1080  ;;  %2307 = vmatmul.mubr.msk.bf16.gmra.mrb[4].mxu0 %vm344_vm0, %v2719_v20 }
  0xec   : > { %v1077_v22 = vpop.permute.xlu1 %1076  ;;  %v1105_v23 = vsel %vm1100_vm4, %v1079_v15, %v1081_v21  ;;  %1163 = vmatprep.mubr.bf16.mxu0 %v2744_v0 }
  0xed   : > { %v1104_v24 = vsel %vm1100_vm4, %v1077_v22, %v1079_v15  ;;  %1666 = vrot.lane.b32.xlu0 %v2907_v18, %s2751_s17  ;;  %1133 = vmatprep.subr.bf16.mxu0 %v1105_v23 }
  0xee   : > { %1838 = vrot.lane.b32.xlu1 %v2810_v2, %s2752_s24  ;;  %1134 = vmatpush1.bf16.msra.mxu0 %v1104_v24 }
  0xef   : > { %v1075_v26 = vpop.permute.xlu0 %1074  ;;  %2469 = vmatmul.mubr.msk.bf16.vlgmr.msra.gmra.mrb[0].mxu1 %vm344_vm0, %v2719_v20  ;;  %v2723_v20 = vld [vmem:[%s3326_s1 + $0x58] sm:$0xff]  }
  0xf0   : > { %v1087_v27 = vpop.permute.xlu1 %1086  ;;  %v1103_v28 = vsel %vm1100_vm4, %v1073_v60, %v1075_v26  ;;  %2480 = vmatprep.mubr.msk.bf16.mxu1 %vm344_vm0, %v2720_v25  ;;  %v2724_v26 = vld [vmem:[%s3326_s1 + $0x60] sm:$0xff]  }
  0xf1   : > { %1840 = vrot.lane.b32.xlu0 %v2818_v4, %s2752_s24  ;;  %2472 = vmatprep.subr.bf16.mxu1 %v1103_v28 }
  0xf2   : > { %1836 = vrot.lane.b32.xlu1 %v2813_v3, %s2752_s24  ;;  %2473 = vmatpush3.bf16.msra.mxu1 %v1103_v28 }
  0xf3   : > { %v1089_v2 = vpop.permute.xlu0 %1088 }
  0xf4   : > { %v1085_v29 = vpop.permute.xlu1 %1084  ;;  %v1108_v30 = vsel %vm1100_vm4, %v1087_v27, %v1089_v2 }
  0xf5   : > { %v1107_v31 = vsel %vm1100_vm4, %v1085_v29, %v1087_v27  ;;  %1674 = vrot.lane.b32.xlu0 %v2918_v19, %s2751_s17  ;;  %1135 = vmatprep.subr.bf16.mxu0 %v1108_v30 }
  0xf6   : > { %1846 = vrot.lane.b32.xlu1 %v2824_v5, %s2752_s24  ;;  %1136 = vmatpush1.bf16.msra.mxu0 %v1107_v31 }
  0xf7   : > { %v1083_v4 = vpop.permute.xlu0 %1082 }
  0xf8   : > { %v1095_v32 = vpop.permute.xlu1 %1094  ;;  %v1106_v33 = vsel %vm1100_vm4, %v1081_v21, %v1083_v4 }
  0xf9   : > { %1848 = vrot.lane.b32.xlu0 %v2828_v6, %s2752_s24  ;;  %2474 = vmatprep.subr.bf16.mxu1 %v1106_v33 }
  0xfa   : > { %1844 = vrot.lane.b32.xlu1 %v2832_v7, %s2752_s24  ;;  %2475 = vmatpush3.bf16.msra.mxu1 %v1106_v33 }
  0xfb   : > { %v1097_v3 = vpop.permute.xlu0 %1096 }
  0xfc   : > { %v1093_v34 = vpop.permute.xlu1 %1092  ;;  %v1111_v35 = vsel %vm1100_vm4, %v1095_v32, %v1097_v3 }
  0xfd   : > { %v1110_v36 = vsel %vm1100_vm4, %v1093_v34, %v1095_v32  ;;  %1842 = vrot.lane.b32.xlu0 %v2856_v11, %s2752_s24  ;;  %1137 = vmatprep.subr.bf16.mxu0 %v1111_v35 }
  0xfe   : > { %1854 = vrot.lane.b32.xlu1 %v2839_v8, %s2752_s24  ;;  %1138 = vmatpush1.bf16.msra.mxu0 %v1110_v36 }
  0xff   : > { %v1091_v5 = vpop.permute.xlu0 %1090 }
 0x100   : > { %v1263_v6 = vpop.permute.xlu1 %1262  ;;  %v1109_v37 = vsel %vm1100_vm4, %v1089_v2, %v1091_v5 }
 0x101   : > { %1856 = vrot.lane.b32.xlu0 %v2846_v9, %s2752_s24  ;;  %2476 = vmatprep.subr.bf16.mxu1 %v1109_v37 }
 0x102   : > { %1852 = vrot.lane.b32.xlu1 %v2850_v10, %s2752_s24  ;;  %2477 = vmatpush3.bf16.msra.mxu1 %v1109_v37 }
 0x103   : > { %v1265_v7 = vpop.permute.xlu0 %1264  ;;  %2316 = vmatmul.mubr.msk.bf16.vlgmr.msra.gmra.mrb[0].mxu0 %vm344_vm0, %v2720_v25 }
 0x104   : > { %v1261_v11 = vpop.permute.xlu1 %1260  ;;  %v1294_v8 = vsel %vm1292_vm5, %v1263_v6, %v1265_v7  ;;  %1173 = vmatprep.mubr.bf16.mxu0 %v2744_v0 }
 0x105   : > { %v1293_v38 = vsel %vm1292_vm5, %v1261_v11, %v1263_v6  ;;  %1850 = vrot.lane.b32.xlu0 %v2883_v16, %s2752_s24  ;;  %1323 = vmatprep.subr.bf16.mxu0 %v1294_v8 }
 0x106   : > { %1862 = vrot.lane.b32.xlu1 %v2859_v12, %s2752_s24  ;;  %1324 = vmatpush1.bf16.msra.mxu0 %v1293_v38 }
 0x107   : > { %v1099_v9 = vpop.permute.xlu0 %1098 }
 0x108   : > { %v1271_v10 = vpop.permute.xlu1 %1270  ;;  %v1112_v39 = vsel %vm1100_vm4, %v1097_v3, %v1099_v9 }
 0x109   : > { %1864 = vrot.lane.b32.xlu0 %v2862_v13, %s2752_s24  ;;  %2478 = vmatprep.subr.bf16.mxu1 %v1112_v39  ;;  %v2722_v13 = vld [vmem:[%s3326_s1 + $0x50] sm:$0xff]  }
 0x10a   : > { %1860 = vrot.lane.b32.xlu1 %v2868_v14, %s2752_s24  ;;  %2479 = vmatpush3.bf16.msra.mxu1 %v1112_v39  ;;  %v242_v14 = vld [vmem:[%s3327_s2] sm:$0xff] }
 0x10b   : > { %v1273_v16 = vpop.permute.xlu0 %1272  ;;  %2317 = vmatmul.mubr.msk.bf16.gmra.mrb[4].mxu0 %vm344_vm0, %v2721_v40 }
 0x10c   : > { %v1269_v12 = vpop.permute.xlu1 %1268  ;;  %v1297_v41 = vsel %vm1292_vm5, %v1271_v10, %v1273_v16  ;;  %1355 = vmatprep.mubr.bf16.mxu0 %v2744_v0 }
 0x10d   : > { %v1296_v42 = vsel %vm1292_vm5, %v1269_v12, %v1271_v10  ;;  %1858 = vrot.lane.b32.xlu0 %v2907_v18, %s2752_s24  ;;  %1325 = vmatprep.subr.bf16.mxu0 %v1297_v41  ;;  %v243_v18 = vld [vmem:[%s3327_s2 + $0x8] sm:$0xff] }
 0x10e   : > { %1866 = vrot.lane.b32.xlu1 %v2918_v19, %s2752_s24  ;;  %1326 = vmatpush1.bf16.msra.mxu0 %v1296_v42  ;;  %v245_v19 = vld [vmem:[%s3327_s2 + $0x18] sm:$0xff] }
 0x10f   : > { %v1267_v43 = vpop.permute.xlu0 %1266  ;;  %2481 = vmatmul.mubr.msk.bf16.vlgmr.msra.gmra.mrb[0].mxu1 %vm344_vm0, %v2721_v40  ;;  %v2725_v40 = vld [vmem:[%s3326_s1 + $0x68] sm:$0xff]  }
 0x110   : > { %v1279_v44 = vpop.permute.xlu1 %1278  ;;  %v1295_v45 = vsel %vm1292_vm5, %v1265_v7, %v1267_v43  ;;  %2492 = vmatprep.mubr.msk.bf16.mxu1 %vm344_vm0, %v2722_v13 }
 0x111   : > { %2484 = vmatprep.subr.bf16.mxu1 %v1295_v45  ;;  %248 = vperm.xlu0 %2686, %v242_v14   ;;  %v2726_v14 = vld [vmem:[%s3326_s1 + $0x70] sm:$0xff]  }
 0x112   : > { %2485 = vmatpush3.bf16.msra.mxu1 %v1295_v45  ;;  %253 = vperm.xlu1 %2687, %v243_v18  }
 0x113   : > { %v1281_v46 = vpop.permute.xlu0 %1280 }
 0x114   : > { %v1277_v48 = vpop.permute.xlu1 %1276  ;;  %v1300_v49 = vsel %vm1292_vm5, %v1279_v44, %v1281_v46 }
 0x115   : > { %v1299_v50 = vsel %vm1292_vm5, %v1277_v48, %v1279_v44  ;;  %1327 = vmatprep.subr.bf16.mxu0 %v1300_v49  ;;  %263 = vperm.xlu0 %2686, %v245_v19  }
 0x116   : > { %1328 = vmatpush1.bf16.msra.mxu0 %v1299_v50  ;;  %258 = vperm.xlu1 %2687, %v244_v47  }
 0x117   : > { %v1275_v51 = vpop.permute.xlu0 %1274 }
 0x118   : > { %v1287_v53 = vpop.permute.xlu1 %1286  ;;  %v1298_v54 = vsel %vm1292_vm5, %v1273_v16, %v1275_v51 }
 0x119   : > { %2486 = vmatprep.subr.bf16.mxu1 %v1298_v54 }
 0x11a   : > { %2487 = vmatpush3.bf16.msra.mxu1 %v1298_v54  ;;  %2029 = vperm.xlu1 %2687, %v2026_v52  }
 0x11b   : > { %v1289_v55 = vpop.permute.xlu0 %1288 }
 0x11c   : > { %v1285_v56 = vpop.permute.xlu1 %1284  ;;  %v1303_v57 = vsel %vm1292_vm5, %v1287_v53, %v1289_v55 }
 0x11d   : > { %v1302_v58 = vsel %vm1292_vm5, %v1285_v56, %v1287_v53  ;;  %1329 = vmatprep.subr.bf16.mxu0 %v1303_v57 }
 0x11e   : > { %1330 = vmatpush1.bf16.msra.mxu0 %v1302_v58 }
 0x11f   : > { %v1283_v59 = vpop.permute.xlu0 %1282 }
 0x120   : > { %v1455_v60 = vpop.permute.xlu1 %1454  ;;  %v1301_v61 = vsel %vm1292_vm5, %v1281_v46, %v1283_v59 }
 0x121   : > { %2488 = vmatprep.subr.bf16.mxu1 %v1301_v61  ;;  %2326 = vmatmul.mubr.msk.bf16.vlgmr.msra.gmra.mrb[0].mxu0 %vm344_vm0, %v2722_v13 }
 0x122   : > { %2489 = vmatpush3.bf16.msra.mxu1 %v1301_v61  ;;  %1365 = vmatprep.mubr.bf16.mxu0 %v2744_v0 }
 0x123   : > { %v1457_v62 = vpop.permute.xlu0 %1456 }
 0x124   : > { %v1453_v63 = vpop.permute.xlu1 %1452  ;;  %v1486_v1 = vsel %vm1484_vm6, %v1455_v60, %v1457_v62 }
 0x125   : > { %v1485_v15 = vsel %vm1484_vm6, %v1453_v63, %v1455_v60  ;;  %1515 = vmatprep.subr.bf16.mxu0 %v1486_v1  ;;  %v2727_v1 = vld [vmem:[%s3326_s1 + $0x78] sm:$0xff]  }
 0x126   : > { %1516 = vmatpush1.bf16.msra.mxu0 %v1485_v15 }
 0x127   : > { %v1291_v17 = vpop.permute.xlu0 %1290 }
 0x128   : > { %v1463_v21 = vpop.permute.xlu1 %1462  ;;  %v1304_v22 = vsel %vm1292_vm5, %v1289_v55, %v1291_v17 }
 0x129   : > { %2490 = vmatprep.subr.bf16.mxu1 %v1304_v22  ;;  %2327 = vmatmul.mubr.msk.bf16.gmra.mrb[4].mxu0 %vm344_vm0, %v2723_v20 }
 0x12a   : > { %2491 = vmatpush3.bf16.msra.mxu1 %v1304_v22  ;;  %1547 = vmatprep.mubr.bf16.mxu0 %v2744_v0 }
 0x12b   : > { %v1465_v23 = vpop.permute.xlu0 %1464 }
 0x12c   : > { %v1461_v24 = vpop.permute.xlu1 %1460  ;;  %v1489_v25 = vsel %vm1484_vm6, %v1463_v21, %v1465_v23 }
 0x12d   : > { %v1488_v27 = vsel %vm1484_vm6, %v1461_v24, %v1463_v21  ;;  %1517 = vmatprep.subr.bf16.mxu0 %v1489_v25  ;;  %2493 = vmatmul.mubr.msk.bf16.vlgmr.msra.gmra.mrb[0].mxu1 %vm344_vm0, %v2723_v20 }
 0x12e   : > { %1518 = vmatpush1.bf16.msra.mxu0 %v1488_v27  ;;  %2504 = vmatprep.mubr.msk.bf16.mxu1 %vm344_vm0, %v2724_v26 }
 0x12f   : > { %v1459_v28 = vpop.permute.xlu0 %1458 }
 0x130   : > { %v1471_v2 = vpop.permute.xlu1 %1470  ;;  %v1487_v29 = vsel %vm1484_vm6, %v1457_v62, %v1459_v28 }
 0x131   : > { %2496 = vmatprep.subr.bf16.mxu1 %v1487_v29 }
 0x132   : > { %2497 = vmatpush3.bf16.msra.mxu1 %v1487_v29 }
 0x133   : > { %v1473_v30 = vpop.permute.xlu0 %1472 }
 0x134   : > { %v1469_v31 = vpop.permute.xlu1 %1468  ;;  %v1492_v4 = vsel %vm1484_vm6, %v1471_v2, %v1473_v30 }
 0x135   : > { %v1491_v32 = vsel %vm1484_vm6, %v1469_v31, %v1471_v2  ;;  %1519 = vmatprep.subr.bf16.mxu0 %v1492_v4 }
 0x136   : > { %1520 = vmatpush1.bf16.msra.mxu0 %v1491_v32 }
 0x137   : > { %v1467_v33 = vpop.permute.xlu0 %1466 }
 0x138   : > { %v1479_v3 = vpop.permute.xlu1 %1478  ;;  %v1490_v34 = vsel %vm1484_vm6, %v1465_v23, %v1467_v33  ;;  %v2728_v23 = vld [vmem:[%s3326_s1 + $0x80] sm:$0xff]  }
 0x139   : > { %2498 = vmatprep.subr.bf16.mxu1 %v1490_v34 }
 0x13a   : > { %2499 = vmatpush3.bf16.msra.mxu1 %v1490_v34 }
 0x13b   : > { %v1481_v35 = vpop.permute.xlu0 %1480 }
 0x13c   : > { %v1477_v36 = vpop.permute.xlu1 %1476  ;;  %v1495_v5 = vsel %vm1484_vm6, %v1479_v3, %v1481_v35 }
 0x13d   : > { %v1494_v6 = vsel %vm1484_vm6, %v1477_v36, %v1479_v3  ;;  %1521 = vmatprep.subr.bf16.mxu0 %v1495_v5 }
 0x13e   : > { %1522 = vmatpush1.bf16.msra.mxu0 %v1494_v6 }
 0x13f   : > { %v1475_v37 = vpop.permute.xlu0 %1474 }
 0x140   : > { %v1647_v7 = vpop.permute.xlu1 %1646  ;;  %v1493_v11 = vsel %vm1484_vm6, %v1473_v30, %v1475_v37 }
 0x141   : > { %2500 = vmatprep.subr.bf16.mxu1 %v1493_v11  ;;  %2336 = vmatmul.mubr.msk.bf16.vlgmr.msra.gmra.mrb[0].mxu0 %vm344_vm0, %v2724_v26 }
 0x142   : > { %2501 = vmatpush3.bf16.msra.mxu1 %v1493_v11  ;;  %1557 = vmatprep.mubr.bf16.mxu0 %v2744_v0  ;;  %v2753_v11 = vmov 0.0|0.0  }
 0x143   : > { %v1649_v8 = vpop.permute.xlu0 %1648 }
 0x144   : > { %v1645_v38 = vpop.permute.xlu1 %1644  ;;  %v1678_v9 = vsel %vm1676_vm7, %v1647_v7, %v1649_v8 }
 0x145   : > { %v1677_v10 = vsel %vm1676_vm7, %v1645_v38, %v1647_v7  ;;  %1707 = vmatprep.subr.bf16.mxu0 %v1678_v9  ;;  %v2729_v7 = vld [vmem:[%s3326_s1 + $0x88] sm:$0xff]  }
 0x146   : > { %1708 = vmatpush1.bf16.msra.mxu0 %v1677_v10 }
 0x147   : > { %v1483_v39 = vpop.permute.xlu0 %1482 }
 0x148   : > { %v1655_v16 = vpop.permute.xlu1 %1654  ;;  %v1496_v12 = vsel %vm1484_vm6, %v1481_v35, %v1483_v39 }
 0x149   : > { %2502 = vmatprep.subr.bf16.mxu1 %v1496_v12  ;;  %2337 = vmatmul.mubr.msk.bf16.gmra.mrb[4].mxu0 %vm344_vm0, %v2725_v40 }
 0x14a   : > { %2503 = vmatpush3.bf16.msra.mxu1 %v1496_v12  ;;  %1739 = vmatprep.mubr.bf16.mxu0 %v2744_v0 }
 0x14b   : > { %v1657_v41 = vpop.permute.xlu0 %1656 }
 0x14c   : > { %v1653_v42 = vpop.permute.xlu1 %1652  ;;  %v1681_v13 = vsel %vm1676_vm7, %v1655_v16, %v1657_v41 }
 0x14d   : > { %v1680_v43 = vsel %vm1676_vm7, %v1653_v42, %v1655_v16  ;;  %1709 = vmatprep.subr.bf16.mxu0 %v1681_v13  ;;  %2505 = vmatmul.mubr.msk.bf16.vlgmr.msra.gmra.mrb[0].mxu1 %vm344_vm0, %v2725_v40 }
 0x14e   : > { %1710 = vmatpush1.bf16.msra.mxu0 %v1680_v43  ;;  %2516 = vmatprep.mubr.msk.bf16.mxu1 %vm344_vm0, %v2726_v14 }
 0x14f   : > { %v1651_v18 = vpop.permute.xlu0 %1650 }
 0x150   : > { %v1663_v44 = vpop.permute.xlu1 %1662  ;;  %v1679_v45 = vsel %vm1676_vm7, %v1649_v8, %v1651_v18  ;;  %v2754_v8 = vmov 0.0  }
 0x151   : > { %2508 = vmatprep.subr.bf16.mxu1 %v1679_v45 }
 0x152   : > { %2509 = vmatpush3.bf16.msra.mxu1 %v1679_v45 }
 0x153   : > { %v1665_v19 = vpop.permute.xlu0 %1664 }
 0x154   : > { %v1661_v46 = vpop.permute.xlu1 %1660  ;;  %v1684_v47 = vsel %vm1676_vm7, %v1663_v44, %v1665_v19 }
 0x155   : > { %v1683_v48 = vsel %vm1676_vm7, %v1661_v46, %v1663_v44  ;;  %1711 = vmatprep.subr.bf16.mxu0 %v1684_v47 }
 0x156   : > { %1712 = vmatpush1.bf16.msra.mxu0 %v1683_v48 }
 0x157   : > { %v1659_v49 = vpop.permute.xlu0 %1658 }
 0x158   : > { %v1671_v50 = vpop.permute.xlu1 %1670  ;;  %v1682_v51 = vsel %vm1676_vm7, %v1657_v41, %v1659_v49 }
 0x159   : > { %2510 = vmatprep.subr.bf16.mxu1 %v1682_v51 }
 0x15a   : > { %2511 = vmatpush3.bf16.msra.mxu1 %v1682_v51 }
 0x15b   : > { %v1673_v52 = vpop.permute.xlu0 %1672 }
 0x15c   : > { %v1669_v53 = vpop.permute.xlu1 %1668  ;;  %v1687_v54 = vsel %vm1676_vm7, %v1671_v50, %v1673_v52 }
 0x15d   : > { %v1686_v55 = vsel %vm1676_vm7, %v1669_v53, %v1671_v50  ;;  %1713 = vmatprep.subr.bf16.mxu0 %v1687_v54 }
 0x15e   : > { %1714 = vmatpush1.bf16.msra.mxu0 %v1686_v55 }
 0x15f   : > { %v1667_v56 = vpop.permute.xlu0 %1666 }
 0x160   : > { %v1839_v57 = vpop.permute.xlu1 %1838  ;;  %v1685_v58 = vsel %vm1676_vm7, %v1665_v19, %v1667_v56 }
 0x161   : > { %2512 = vmatprep.subr.bf16.mxu1 %v1685_v58  ;;  %2346 = vmatmul.mubr.msk.bf16.vlgmr.msra.gmra.mrb[0].mxu0 %vm344_vm0, %v2726_v14 }
 0x162   : > { %2513 = vmatpush3.bf16.msra.mxu1 %v1685_v58  ;;  %1749 = vmatprep.mubr.bf16.mxu0 %v2744_v0 }
 0x163   : > { %v1841_v59 = vpop.permute.xlu0 %1840 }
 0x164   : > { %v1837_v60 = vpop.permute.xlu1 %1836  ;;  %v1870_v61 = vsel %vm1868_vm8, %v1839_v57, %v1841_v59 }
 0x165   : > { %v1869_v62 = vsel %vm1868_vm8, %v1837_v60, %v1839_v57  ;;  %1899 = vmatprep.subr.bf16.mxu0 %v1870_v61 }
 0x166   : > { %1900 = vmatpush1.bf16.msra.mxu0 %v1869_v62 }
 0x167   : > { %v1675_v63 = vpop.permute.xlu0 %1674 }
 0x168   : > { %v1847_v15 = vpop.permute.xlu1 %1846  ;;  %v1688_v17 = vsel %vm1676_vm7, %v1673_v52, %v1675_v63 }
 0x169   : > { %2514 = vmatprep.subr.bf16.mxu1 %v1688_v17  ;;  %2347 = vmatmul.mubr.msk.bf16.gmra.mrb[4].mxu0 %vm344_vm0, %v2727_v1 }
 0x16a   : > { %2515 = vmatpush3.bf16.msra.mxu1 %v1688_v17  ;;  %1931 = vmatprep.mubr.bf16.mxu0 %v2744_v0 }
 0x16b   : > { %v1849_v20 = vpop.permute.xlu0 %1848 }
 0x16c   : > { %v1845_v21 = vpop.permute.xlu1 %1844  ;;  %v1873_v22 = vsel %vm1868_vm8, %v1847_v15, %v1849_v20 }
 0x16d   : > { %v1872_v24 = vsel %vm1868_vm8, %v1845_v21, %v1847_v15  ;;  %1901 = vmatprep.subr.bf16.mxu0 %v1873_v22  ;;  %2517 = vmatmul.mubr.msk.bf16.vlgmr.msra.gmra.mrb[0].mxu1 %vm344_vm0, %v2727_v1 }
 0x16e   : > { %1902 = vmatpush1.bf16.msra.mxu0 %v1872_v24  ;;  %2528 = vmatprep.mubr.msk.bf16.mxu1 %vm344_vm0, %v2728_v23 }
 0x16f   : > { %v1843_v25 = vpop.permute.xlu0 %1842 }
 0x170   : > { %v1855_v26 = vpop.permute.xlu1 %1854  ;;  %v1871_v27 = vsel %vm1868_vm8, %v1841_v59, %v1843_v25 }
 0x171   : > { %2520 = vmatprep.subr.bf16.mxu1 %v1871_v27 }
 0x172   : > { %2521 = vmatpush3.bf16.msra.mxu1 %v1871_v27 }
 0x173   : > { %v1857_v28 = vpop.permute.xlu0 %1856 }
 0x174   : > { %v1853_v2 = vpop.permute.xlu1 %1852  ;;  %v1876_v29 = vsel %vm1868_vm8, %v1855_v26, %v1857_v28 }
 0x175   : > { %v1875_v30 = vsel %vm1868_vm8, %v1853_v2, %v1855_v26  ;;  %1903 = vmatprep.subr.bf16.mxu0 %v1876_v29 }
 0x176   : > { %1904 = vmatpush1.bf16.msra.mxu0 %v1875_v30 }
 0x177   : > { %v1851_v31 = vpop.permute.xlu0 %1850 }
 0x178   : > { %v1863_v4 = vpop.permute.xlu1 %1862  ;;  %v1874_v32 = vsel %vm1868_vm8, %v1849_v20, %v1851_v31 }
 0x179   : > { %2522 = vmatprep.subr.bf16.mxu1 %v1874_v32 }
 0x17a   : > { %2523 = vmatpush3.bf16.msra.mxu1 %v1874_v32 }
 0x17b   : > { %v1865_v33 = vpop.permute.xlu0 %1864 }
 0x17c   : > { %v1861_v3 = vpop.permute.xlu1 %1860  ;;  %v1879_v34 = vsel %vm1868_vm8, %v1863_v4, %v1865_v33 }
 0x17d   : > { %v1878_v35 = vsel %vm1868_vm8, %v1861_v3, %v1863_v4  ;;  %1905 = vmatprep.subr.bf16.mxu0 %v1879_v34 }
 0x17e   : > { %1906 = vmatpush1.bf16.msra.mxu0 %v1878_v35 }
 0x17f   : > { %v1859_v36 = vpop.permute.xlu0 %1858  ;;  %2551 = vmatprep.subr.bf16.mxu0 %v2753_v11 }
 0x180   : > { %v1867_v5 = vpop.permute.xlu1 %1866  ;;  %v1877_v6 = vsel %vm1868_vm8, %v1857_v28, %v1859_v36  ;;  %v2025_v28 = vld [vmem:[%s3328_s3] sm:$0xf] }
 0x181   : > { %2356 = vmatmul.mubr.msk.bf16.vlgmr.msra.gmra.mrb[0].mxu0 %vm344_vm0, %v2728_v23  ;;  %2524 = vmatprep.subr.bf16.mxu1 %v1877_v6  ;;  %v1880_v37 = vsel %vm1868_vm8, %v1865_v33, %v1867_v5 }
 0x182   : > { %2525 = vmatpush3.bf16.msra.mxu1 %v1877_v6  ;;  %1941 = vmatprep.mubr.bf16.mxu0 %v2744_v0 }
 0x183   : > { %2526 = vmatprep.subr.bf16.mxu1 %v1880_v37 }
 0x186   : > { %2527 = vmatpush3.bf16.msra.mxu1 %v1880_v37 }
 0x189   : > { %2357 = vmatmul.mubr.msk.bf16.gmra.mrb[4].mxu0 %vm344_vm0, %v2729_v7  ;;  %2529 = vmatmul.mubr.msk.bf16.vlgmr.msra.gmra.mrb[0].mxu1 %vm344_vm0, %v2729_v7 }
 0x18a   : > { %2100 = vmatprep.mubr.f32.mxu1 %v2754_v8  ;;  %2540 = vmatprep.mubr.msk.f32.mxu0 %vm2755_vm9, %v2754_v8 }
 0x190   : > { %v249_v38 = vpop.permute.xlu0 %248 }
 0x191   : > { %v254_v39 = vpop.permute.xlu1 %253 }
 0x194   : > { %v264_v19 = vpop.permute.xlu0 %263 }
 0x195   : > { %v259_v45 = vpop.permute.xlu1 %258 }
 0x199   : > { %v2030_v2 = vpop.permute.xlu1 %2029 }
 0x254   : > { %v1933_v9 = vpop.f32.mrb[0].mxu0 }
 0x255   : > { %v2557_v10 = vadd.f32 %v1933_v9, %v249_v38  ;;  %v1935_v0 = vpop.f32.mrb[1].mxu0 }
 0x256   : > { %v2558_v40 = vadd.f32 %v1935_v0, %v249_v38  ;;  %v1937_v16 = vpop.f32.mrb[2].mxu0 }
 0x257   : > { %v2559_v12 = vadd.f32 %v1937_v16, %v254_v39  ;;  %v1939_v41 = vpop.f32.mrb[3].mxu0  ;;  %v2013_v13 = vmax.f32 %v2557_v10, 0.0 }
 0x258   : > { %v2560_v42 = vadd.f32 %v1939_v41, %v254_v39  ;;  %v2014_v43 = vmax.f32 %v2558_v40, 0.0 }
 0x259   : > { %v2016_v14 = vmax.f32 %v2559_v12, 0.0 }
 0x25a   : > { %v2017_v18 = vmax.f32 %v2560_v42, 0.0 }
 0x25b   : > { %v2545_v44 = vpack.c.bf16 %v2016_v14, %v2013_v13 }
 0x25c   : > { %v2543_v46 = vpack.c.bf16 %v2017_v18, %v2014_v43  ;;  %v1943_v47 = vpop.f32.mrb[4].mxu0  ;;  %v2530_v48 = vpop.f32.mrb[0].mxu1 }
 0x25d   : > { %v2561_v49 = vadd.f32 %v1943_v47, %v259_v45  ;;  %v2565_v50 = vadd.f32 %v2530_v48, %v259_v45  ;;  %v1945_v51 = vpop.f32.mrb[5].mxu0  ;;  %v1986_v52 = vpop.f32.mrb[1].mxu1 }
 0x25e   : > { %v2562_v53 = vadd.f32 %v1945_v51, %v259_v45  ;;  %v2566_v54 = vadd.f32 %v1986_v52, %v249_v38  ;;  %v1947_v55 = vpop.f32.mrb[6].mxu0  ;;  %v2531_v56 = vpop.f32.mrb[2].mxu1  ;;  %2544 = vmatprep.subr.bf16.mxu1 %v2543_v46 }
 0x25f   : > { %v2563_v57 = vadd.f32 %v1947_v55, %v264_v19  ;;  %v2567_v58 = vadd.f32 %v2531_v56, %v264_v19  ;;  %v1989_v59 = vpop.f32.mrb[3].mxu1  ;;  %v1949_v60 = vpop.f32.mrb[7].mxu0  ;;  %2546 = vmatpush1.bf16.msra.mxu1 %v2545_v44  ;;  %v2019_v63 = vmax.f32 %v2561_v49, 0.0  ;;  %v2021_v1 = vmax.f32 %v2565_v50, 0.0 }
 0x260   : > { %v2568_v61 = vadd.f32 %v1989_v59, %v254_v39  ;;  %v2564_v62 = vadd.f32 %v1949_v60, %v264_v19  ;;  %v2020_v20 = vmax.f32 %v2562_v53, 0.0  ;;  %v2015_v21 = vmax.f32 %v2566_v54, 0.0 }
 0x261   : > { %v2022_v15 = vmax.f32 %v2563_v57, 0.0  ;;  %v2024_v17 = vmax.f32 %v2567_v58, 0.0 }
 0x262   : > { %v2018_v22 = vmax.f32 %v2568_v61, 0.0  ;;  %v2023_v23 = vmax.f32 %v2564_v62, 0.0 }
 0x263   : > { %v2549_v24 = vpack.c.bf16 %v2022_v15, %v2019_v63  ;;  %v2555_v25 = vpack.c.bf16 %v2024_v17, %v2021_v1 }
 0x264   : > { %v2552_v26 = vpack.c.bf16 %v2018_v22, %v2015_v21  ;;  %v2547_v27 = vpack.c.bf16 %v2023_v23, %v2020_v20 }
 0x266   : > { %2548 = vmatprep.subr.bf16.mxu1 %v2547_v27  ;;  %2553 = vmatpush3.bf16.msra.mxu0 %v2552_v26 }
 0x267   : > { %2550 = vmatpush1.bf16.msra.mxu1 %v2549_v24  ;;  %2554 = vmatprep.subr.bf16.mxu0 %v2753_v11 }
 0x26a   : > { %2360 = vmatmul.mubr.msk.f32.vlgmr.msra.gmra.mrb[4].mxu1 %vm2032_vm10, %v2025_v28  ;;  %2556 = vmatpush3.bf16.msra.mxu0 %v2555_v25 }
 0x26d   : > { %2541 = vmatmul.mubr.msk.f32.vlgmr.msra.gmra.mrb[8].mxu0 %vm2032_vm10, %v2025_v28 }
 0x33d   : > { %v2102_v29 = vpop.f32.mrb[4].mxu1 }
 0x33e   : > { %v2103_v30 = vadd.f32 %v2102_v29, %v2030_v2  ;;  %v2104_v31 = vpop.f32.mrb[5].mxu1 }
 0x33f   : > { %v2105_v4 = vadd.f32 %v2104_v31, %v2030_v2 }
 0x340   : > { %v2177_v32 = vmul.f32 0.5, %v2103_v30  ;;  %v2173_v33 = vpop.f32.mrb[8].mxu0 }
 0x341   : > { %v2178_v3 = vmul.f32 0.5, %v2105_v4  ;;  %v2174_v34 = vadd.f32 %v2173_v33, %v2030_v2  ;;  %v2542_v35 = vpop.f32.mrb[9].mxu0 }
 0x342   : > { %2730 = vtanh.f32 %v2177_v32 }
 0x343   : > { %2732 = vtanh.f32 %v2178_v3  ;;  %v2179_v36 = vmul.f32 0.5, %v2174_v34 }
 0x345   : > { %2734 = vtanh.f32 %v2179_v36 }
 0x34c   : > { %v2731_v5 = vpop.eup %2730 }
 0x34d   : > { %v2733_v6 = vpop.eup %2732  ;;  %v2183_v37 = vmul.f32 0.5, %v2731_v5 }
 0x34e   : > { %v2184_v7 = vmul.f32 0.5, %v2733_v6 }
 0x34f   : > { %v2735_v11 = vpop.eup %2734  ;;  %v2186_v8 = vadd.f32 0.5, %v2183_v37 }
 0x350   : > { %v2187_v38 = vadd.f32 0.5, %v2184_v7  ;;  %v2185_v9 = vmul.f32 0.5, %v2735_v11 }
 0x352   : > { %v2191_v10 = vcombine.low %v2186_v8, %v2187_v38  ;;  %v2188_v0 = vadd.f32 0.5, %v2185_v9 }
 0x354   : > { %2193 = vst [vmem:[%s224_s12] sm:$0xff] %v2191_v10  ;;  %2194 = vst [vmem:[%s224_s12 + $0x8] sm:$0xf] %v2188_v0 }
 0x355 PF: > { %s15_s18 = sadd.s32 1, %s2742_s18  }
 0x356   : > { %p12_p4 = scmp.ge.s32.totalorder %s15_s18, 4  }
 0x358   :  { %14 = sbr.rel (!%p12_p4) target bundleno = 1 (0x1), region = 78 }

</bundles_post_ra>
